<compile_context>
chip_gen: v5e
topology: v5e:2x2
jax: 0.10.0
libtpu: 0.0.40
codegen_flags: <defaults>
</compile_context>

<pallas_src>
import jax
import jax.numpy as jnp
from jax.experimental import pallas as pl
from jax.experimental.pallas import tpu as pltpu

_LANE = 128
_MASK_SUBLANE = 32          # int8 packs 4/sublane -> native tile (32, 128)
_MiB = 1024 * 1024


def _masked_fill_kernel(mask_ref, value_ref, img_ref, out_ref):
    """Pure streaming masked fill (memory-bound; one select per element).

    mask_ref : (rows, tile) int8      -- nonzero == masked pixel
    value_ref: (rows, 1)    img dtype -- per-row (i.e. per-channel) fill value
    img_ref  : (rows, tile) img dtype
    out_ref  : (rows, tile) img dtype
    """
    m = mask_ref[...]
    v = value_ref[...]
    x = img_ref[...]
    out_ref[...] = jnp.where(m != 0, v, x).astype(out_ref.dtype)


def _largest_aligned_divisor(n, align, cap):
    """Largest d with d | n, d % align == 0, d <= cap; None if no such d."""
    cap = (min(cap, n) // align) * align
    for cand in range(cap, 0, -align):
        if n % cand == 0:
            return cand
    return None


def _choose_blocks(R, F, itemsize, target_bytes):
    """Pick (rows, tile, pad_cols, F_padded) for a (R, F) streaming layout."""
    pad_cols = 0
    # ---- lane (last) axis -------------------------------------------------
    if F * itemsize <= target_bytes:
        tile = F                                        # full extent
    else:
        cap = max(_LANE, target_bytes // itemsize)
        tile = _largest_aligned_divisor(F, _LANE, cap)
        if tile is None:                                # pad lanes up to 128-mult
            Fp = ((F + _LANE - 1) // _LANE) * _LANE
            pad_cols = Fp - F
            F = Fp
            tile = _largest_aligned_divisor(F, _LANE, cap)  # >=128, always found
    # ---- sublane (row) axis ------------------------------------------------
    row_budget = max(1, target_bytes // (tile * itemsize))
    if R <= row_budget:
        rows = R                                        # full extent
    else:
        rows = _largest_aligned_divisor(R, _MASK_SUBLANE, row_budget)
        if rows is None:
            rows = R                                    # full extent fallback
            if rows * tile * itemsize > target_bytes:   # shrink lanes instead
                cap2 = max(_LANE, target_bytes // (rows * itemsize))
                t2 = _largest_aligned_divisor(F, _LANE, cap2)
                if t2 is not None:
                    tile = t2
    # ---- guarantee >= 2 grid steps (megacore sharding + pipelining) --------
    if (R // rows) * (F // tile) < 2:
        t2 = _largest_aligned_divisor(F, _LANE, F // 2) if F >= 2 * _LANE else None
        if t2 is not None:
            tile = t2
        else:
            r2 = (_largest_aligned_divisor(R, _MASK_SUBLANE, R // 2)
                  if R >= 2 * _MASK_SUBLANE else None)
            if r2 is not None:
                rows = r2
    return rows, tile, pad_cols, F


def random_masking(img, patch_mask, value, patch_size, *, target_block_bytes=6 * _MiB):
    """img: (B, C, H, W); patch_mask: (B, n_vert, n_hor) 0/1;
    value: scalar or (C,) per-channel fill value."""
    if img.ndim == 3:                                   # mirror torch unsqueeze(0)
        img = img[None]
    B, C, H, W = img.shape
    ph, pw = patch_size
    if H % ph != 0 or W % pw != 0:
        raise ValueError("Patch size must fit perfectly in image size.")

    dtype = img.dtype
    value = jnp.asarray(value, dtype=dtype).reshape(-1)
    if value.shape[0] == 1:
        value = jnp.broadcast_to(value, (C,))
    # per-row fill table: row = b*C + c  ->  value[c]
    value_rows = jnp.tile(value, (B,)).reshape(B * C, 1)

    # Grid-invariant patch->pixel expansion hoisted out of the kernel, stored
    # as int8, expanded over channels so the kernel streams a flat 2-D layout.
    pix = jnp.repeat(jnp.repeat(patch_mask.astype(jnp.int8), ph, axis=1),
                     pw, axis=2)                        # (B, H, W) int8
    flat = H * W
    R = B * C
    mask2d = jnp.broadcast_to(pix[:, None, :, :], (B, C, H, W)).reshape(R, flat)
    img2d = img.reshape(R, flat)                        # free bitcast reshape

    rows, tile, pad_cols, F = _choose_blocks(R, flat, dtype.itemsize,
                                             target_block_bytes)
    if pad_cols:
        img2d = jnp.pad(img2d, ((0, 0), (0, pad_cols)))
        mask2d = jnp.pad(mask2d, ((0, 0), (0, pad_cols)))

    grid = (R // rows, F // tile)

    # Exact (padding-inclusive) double-buffered VMEM footprint.
    def _buf_bytes(r, c, isz, sub):
        rp = -(-r // sub) * sub
        cp = -(-c // _LANE) * _LANE
        return rp * cp * isz

    img_sub = max(8, 32 // max(1, dtype.itemsize))      # 8 f32 / 16 bf16 / 32 i8
    vmem_need = 2 * (2 * _buf_bytes(rows, tile, dtype.itemsize, img_sub)   # img+out
                     + _buf_bytes(rows, tile, 1, _MASK_SUBLANE)            # mask
                     + _buf_bytes(rows, 1, dtype.itemsize, img_sub))       # values
    vmem_limit = int(min(48 * _MiB, max(vmem_need + 4 * _MiB, 24 * _MiB)))

    out = pl.pallas_call(
        _masked_fill_kernel,
        out_shape=jax.ShapeDtypeStruct((R, F), dtype),
        grid_spec=pltpu.PrefetchScalarGridSpec(
            num_scalar_prefetch=0,
            grid=grid,
            in_specs=[
                pl.BlockSpec((rows, tile), lambda r, t: (r, t)),   # int8 mask
                pl.BlockSpec((rows, 1), lambda r, t: (r, 0)),      # fill values
                pl.BlockSpec((rows, tile), lambda r, t: (r, t)),   # image
            ],
            out_specs=pl.BlockSpec((rows, tile), lambda r, t: (r, t)),
        ),
        compiler_params=pltpu.CompilerParams(
            dimension_semantics=("parallel", "parallel"),
            vmem_limit_bytes=vmem_limit,
        ),
    )(mask2d, value_rows, img2d)

    if pad_cols:
        out = out[:, :flat]
    return out.reshape(B, C, H, W)


if __name__ == "__main__":
    # Module config (mirrors RandomMasking(p_mask, patch_size, value))
    p_mask = 0.5
    patch_size = (4, 4)
    value = jnp.asarray([0.0, 0.5, 1.0], dtype=jnp.float32)   # per-RGB fill value

    B, C, H, W = 2, 3, 16, 16
    ph, pw = patch_size
    n_vert, n_hor = H // ph, W // pw

    key = jax.random.PRNGKey(0)
    k_img, k_mask = jax.random.split(key)
    img = jax.random.normal(k_img, (B, C, H, W), dtype=jnp.float32)
    # Bernoulli(p_mask) per patch -- deterministic stand-in for np.random.binomial
    patch_mask = jax.random.bernoulli(k_mask, p_mask,
                                      (B, n_vert, n_hor)).astype(jnp.float32)

    out = random_masking(img, patch_mask, value, patch_size)
    out = jax.block_until_ready(out)

    # Pure-JAX reference for correctness check
    pix = jnp.repeat(jnp.repeat(patch_mask, ph, axis=1), pw, axis=2)  # (B, H, W)
    expected = jnp.where(pix[:, None, :, :] > 0.5,
                         value[None, :, None, None], img)
    assert out.shape == img.shape and out.dtype == img.dtype
    assert jnp.allclose(out, expected), "mismatch vs reference"

    print("KERNEL_OK")
</pallas_src>

<mosaic_0001>
module attributes {stable_mosaic.version = 11 : i64} {
  func.func @_masked_fill_kernel(%arg0: i32, %arg1: i32, %arg2: memref<6x128xi8, #tpu.memory_space<vmem>>, %arg3: memref<6x1xf32, #tpu.memory_space<vmem>>, %arg4: memref<6x128xf32, #tpu.memory_space<vmem>>, %arg5: memref<6x128xf32, #tpu.memory_space<vmem>>) attributes {dimension_semantics = [#tpu.dimension_semantics<parallel>, #tpu.dimension_semantics<parallel>], iteration_bounds = array<i64: 1, 2>, scalar_prefetch = 0 : i64, scratch_operands = 0 : i64, tpu.core_type = #tpu.core_type<tc>, window_params = [{transform_indices = @transform_0, window_bounds = array<i64: 6, 128>}, {transform_indices = @transform_1, window_bounds = array<i64: 6, 1>}, {transform_indices = @transform_2, window_bounds = array<i64: 6, 128>}, {transform_indices = @transform_3, window_bounds = array<i64: 6, 128>}]} {
    %c0 = arith.constant 0 : index
    %c0_0 = arith.constant 0 : index
    %0 = vector.load %arg2[%c0, %c0_0] : memref<6x128xi8, #tpu.memory_space<vmem>>, vector<6x128xi8>
    %c0_1 = arith.constant 0 : index
    %c0_2 = arith.constant 0 : index
    %1 = vector.load %arg3[%c0_1, %c0_2] : memref<6x1xf32, #tpu.memory_space<vmem>>, vector<6x1xf32>
    %c0_3 = arith.constant 0 : index
    %c0_4 = arith.constant 0 : index
    %2 = vector.load %arg4[%c0_3, %c0_4] : memref<6x128xf32, #tpu.memory_space<vmem>>, vector<6x128xf32>
    %c0_i8 = arith.constant 0 : i8
    %3 = vector.broadcast %c0_i8 : i8 to vector<6x128xi8>
    %4 = arith.cmpi ne, %0, %3 : vector<6x128xi8>
    %5 = vector.shape_cast %1 : vector<6x1xf32> to vector<6x1xf32>
    %6 = vector.broadcast %5 : vector<6x1xf32> to vector<6x128xf32>
    %7 = arith.select %4, %6, %2 : vector<6x128xi1>, vector<6x128xf32>
    %c0_5 = arith.constant 0 : index
    %c0_6 = arith.constant 0 : index
    %8 = vector.load %arg5[%c0_5, %c0_6] : memref<6x128xf32, #tpu.memory_space<vmem>>, vector<6x128xf32>
    tpu.vector_store %arg5[%c0_5, %c0_6], %7 {strides = array<i32>} : memref<6x128xf32, #tpu.memory_space<vmem>>, vector<6x128xf32>,
    return
  }
  func.func @transform_0(%arg0: i32, %arg1: i32) -> (i32, i32) {
    %c0_i32 = arith.constant 0 : i32
    return %arg0, %arg1 : i32, i32
  }
  func.func @transform_1(%arg0: i32, %arg1: i32) -> (i32, i32) {
    %c0_i32 = arith.constant 0 : i32
    %c0_i32_0 = arith.constant 0 : i32
    return %arg0, %c0_i32 : i32, i32
  }
  func.func @transform_2(%arg0: i32, %arg1: i32) -> (i32, i32) {
    %c0_i32 = arith.constant 0 : i32
    return %arg0, %arg1 : i32, i32
  }
  func.func @transform_3(%arg0: i32, %arg1: i32) -> (i32, i32) {
    %c0_i32 = arith.constant 0 : i32
    return %arg0, %arg1 : i32, i32
  }
}

</mosaic_0001>

<bundles_post_ra>
// kernel: tpu_custom_call.1
= control target key start
LH: loop header
LB: loop body
LE: loop exit
PB: predicated region body
PF: predicated region fallthrough
CT: control target
= control target key end

     0   :  { %8 = vsyncpa [#allocation3], 0  ;;  %s745_s0 = inlined_call_operand.vmem [shape: s8[6,256], index: 0, kind: input, shape index: {}]   ;;  %s746_s1 = inlined_call_operand.vmem [shape: f32[6,1], index: 1, kind: input, shape index: {}]   ;;  %s747_s2 = inlined_call_operand.hbm [shape: f32[6,256], index: 2, kind: input, shape index: {}]   ;;  %s748_s3 = inlined_call_operand.hbm [shape: f32[6,256], index: 3, kind: output, shape index: {}]  }
   0x1   :  { %10 = vsyncpa [#allocation3 + $0x1], 0 }
   0x2   :  { %11 = vsyncpa [#allocation4], 0 }
   0x3   :  { %13 = vsyncpa [#allocation4 + $0x1], 0  ;;  %s617_s12 = smov 0   ;;  %s619_s13 = smov 0  }
   0x4   :  { %s621_s14 = smov 0   ;;  %s623_s15 = smov 0  }
   0x5   :  { %s625_s16 = smov 0   ;;  %s627_s17 = smov 0  }
   0x6 LB: > { %s403_s18 = sadd.s32 4294967295, %s594_s17   ;;  %s404_s19 = sadd.s32 4294967294, %s594_s17   ;;  %s594_s17 = sphi %s627_s17, %s19_s17   ;;  %s590_s16 = sphi %s625_s16, %s757_s16   ;;  %s586_s15 = sphi %s623_s15, %s756_s15   ;;  %s582_s14 = sphi %s621_s14, %s755_s14   ;;  %s578_s13 = sphi %s619_s13, %s754_s13   ;;  %s574_s12 = sphi %s617_s12, %s753_s12  }
   0x7   : > { %s28_s20 = sadd.s32 1, %s590_s16  ;;  %s94_s21 = sadd.s32 1, %s582_s14 }
   0x8   : > { %p29_p0 = scmp.ge.s32.totalorder %s28_s20, 2  ;;  %p101_p1 = scmp.ne.s32.totalorder %s582_s14, %s578_s13 }
   0x9   : > { %p102_p2 = scmp.eq.s32.totalorder %s594_s17, 0  ;;  %p107_p3 = scmp.ne.s32.totalorder %s578_s13, %s574_s12 }
   0xa   : > { %s759_s20 = smov (%p29_p0, %s28_s20), 0  ;;  %p108_p5 = scmp.eq.s32.totalorder %s403_s18, 0 }
   0xb   : > { %p658_p4 = por %p102_p2, %p101_p1  ;;  %s90_s23 = ssub.s32 %s590_s16, %s759_s20 }
   0xc   : > { %p133_p6 = scmp.eq.s32.totalorder %s403_s18, 1  ;;  %p92_p7 = scmp.eq.s32.totalorder %s90_s23, 0 }
   0xd   : > { %p664_p8 = por %p108_p5, %p107_p3  ;;  %p139_p10 = scmp.eq.s32.totalorder %s404_s19, 1 }
   0xe   : > { %p668_p9 = por %p133_p6, %p101_p1  ;;  %p407_p12 = scmp.ge.s32.totalorder %s594_s17, 2 }
   0xf   : > { %s673_s26 = scalar_select %p92_p7, %s582_s14, %s94_s21  }
  0x10   : > { %p675_p11 = por %p139_p10, %p107_p3  ;;  %p430_p13 = scmp.lt.s32.totalorder %s594_s17, 2 }
  0x11   : > { %s177_s28 = sand.u32 1, %s582_s14   ;;  %s409_s30 = sshll.u32 %s590_s16, 3 }
  0x12   : > { %s408_s29 = sshll.u32 %s177_s28, 3  ;;  %s187_s6 = scalar_lea.hbm %s747_s2, %s409_s30 }
  0x13   : > { %s181_s7 = scalar_lea.vmem [#allocation2], %s408_s29  ;;  %s189_s9 = sshll.u32 %s187_s6, 4  ;;  %s190_s9 = int_to_ptr.hbm [resolvable:$true] %s189_s9 }
  0x14   : > { %s191_s8 = sshll.u32 %s181_s7, 4  ;;  %p423_p0 = pnand %p430_p13, %p658_p4  ;;  %s192_s8 = int_to_ptr.vmem [resolvable:$true] %s191_s8 }
  0x15   : > { %p410_p1 = scmp.ge.s32.totalorder %s594_s17, 1  ;;  %p196_p2 = scmp.lt.s32.totalorder %s594_s17, 3 }
  0x16   : > { %s178_s10 = scalar_lea.sflag [#allocation3], %s177_s28 }
  0x17   : > { %425 = dma.hbm_to_vmem [thread:$0]  (!%p423_p0), %s190_s9, 128, %s192_s8, %s178_s10  }
  0x18   : > { %p197_p3 = pnand %p410_p1, %p196_p2 }
  0x19   : > { %s691_s11 = sand.u32 (!%p197_p3), 1, %s578_s13  }
  0x1a   : > { %200 = sbr.rel (%p197_p3) target bundleno = 153 (0x99), region = 32  ;;  %s411_s18 = sshll.u32 (!%p197_p3), %s691_s11, 3 }
  0x1b   : > { %s203_s19 = scalar_lea.sflag (!%p197_p3), [#allocation3], %s691_s11  ;;  %s206_s21 = scalar_lea.vmem (!%p197_p3), [#allocation2], %s411_s18 }
  0x1f   : > { %565 = dma.done.wait (%p664_p8), %s203_s19, 128  }
  0x20   : > { %567 = vsyncadd (%p664_p8), %s203_s19, 4294967168  ;;  %v596_v0 = vmov 0   ;;  %v257_v1 = vld [vmem:[%s746_s1] sm:$0x3f]  ;;  %p244_p4 = scmp.lt.s32.totalorder %s586_s15, 1  ;;  %s415_s24 = sshll.u32 %s586_s15, 3 }
  0x21   : > { %481 = vset.pattern.permute.xlu0 %v596_v0  ;;  %s283_s8 = scalar_lea.hbm %s748_s3, %s415_s24  ;;  %s241_s9 = scalar_lea.vmem [#allocation5], %s411_s18  ;;  %v258_v5 = vld [vmem:[%s206_s21] sm:$0x3f] }
  0x22   : > { %262 = vperm.xlu0 %481, %v257_v1   ;;  %s245_s28 = scalar_select %p244_p4, %s586_s15, 1 }
  0x23   : > { %s285_s10 = sshll.u32 %s241_s9, 4  ;;  %s287_s19 = sshll.u32 %s283_s8, 4  ;;  %s286_s10 = int_to_ptr.vmem [resolvable:$true] %s285_s10  ;;  %s288_s19 = int_to_ptr.hbm [resolvable:$true] %s287_s19 }
  0x24   : > { %s413_s29 = sshll.u32 %s245_s28, 1  ;;  %s271_s22 = scalar_lea.sflag [#allocation4], %s691_s11 }
  0x25   : > { %s249_s5 = scalar_lea.vmem %s745_s0, %s413_s29  ;;  %s526_s23 = sshra.s32 %s288_s19, 4  ;;  %s527_s23 = int_to_ptr.hbm [resolvable:$true] %s526_s23 }
  0x26   : > { %v256_v2 = vld [vmem:[%s249_s5] sm:$0x3]  ;;  %s528_s15 = scalar_lea.hbm %s527_s23, 8  ;;  %s532_s18 = scalar_lea.hbm %s748_s3, 16 }
  0x27   : > { %vm259_vm0 = vnez %v256_v2  ;;  %p529_p5 = scmp.ne.s32.totalorder %s527_s23, %s528_s15  ;;  %p533_p8 = scmp.lt.s32.totalorder %s527_s23, %s748_s3 }
  0x28   : > { %v265_v3 = vsel %vm259_vm0, 16843009, %v596_v0  ;;  %p534_p10 = scmp.lt.s32.totalorder %s532_s18, %s528_s15 }
  0x29   : > { %v266_v4 = vunpack.c.0.s8 %v265_v3  ;;  %p530_p6 = pnand %p529_p5, %p668_p9 }
  0x2a   : > { %p535_p13 = por %p534_p10, %p533_p8 }
  0x2b   : > { %vm267_vm1 = vcmp.ne.s32.totalorder %v266_v4, 0  ;;  %p531_p7 = pneg %p530_p6 }
  0x2d   : > { %p536_p0 = pnand %p535_p13, %p531_p7 }
  0x94   : > { %v263_v6 = vpop.permute.xlu0 %262 }
  0x95   : > { %v268_v7 = vsel %vm267_vm1, %v263_v6, %v258_v5 }
  0x96   : > { %269 = vst [vmem:[%s241_s9] sm:$0x3f] %v268_v7 }
  0x97   : > { %539 = shalt.err (!%p536_p0)
}
  0x98   : > { %420 = dma.vmem_to_hbm [thread:$0]  (%p668_p9), %s286_s10, 128, %s288_s19, %s271_s22  }
  0x99 PF: > { %s299_s11 = sand.u32 1, %s574_s12   ;;  %p427_p1 = pnand %p407_p12, %p675_p11 }
  0x9a   : > { %s300_s21 = scalar_lea.sflag [#allocation4], %s299_s11 }
  0x9b   : > { %p428_p2 = pneg %p427_p1 }
  0x9d   : > { %569 = dma.done.wait (%p428_p2), %s300_s21, 128  }
  0x9e   : > { %571 = vsyncadd (%p428_p2), %s300_s21, 4294967168  ;;  %s19_s17 = sadd.s32 1, %s594_s17   ;;  %s753_s12 = smov %s578_s13 }
  0x9f   : > { %p16_p3 = scmp.ge.s32.totalorder %s19_s17, 4   ;;  %s754_s13 = smov %s582_s14 }
  0xa0   : > { %s755_s14 = smov %s673_s26  ;;  %s756_s15 = smov %s590_s16 }
  0xa1   : > { %s757_s16 = smov %s759_s20  ;;  %18 = sbr.rel (!%p16_p3) target bundleno = 6 (0x6), region = 83 }
  0xa6   :  { %306 = vsyncpa [#allocation3], 1 }
  0xa7   :  { %308 = vsyncpa [#allocation3 + $0x1], 1 }
  0xa8   :  { %309 = vsyncpa [#allocation4], 1 }
  0xa9   :  { %311 = vsyncpa [#allocation4 + $0x1], 1 }

</bundles_post_ra>
